<compile_context>
chip_gen: v7x
topology: tpu7x:2x2x1
jax: 0.10.0
libtpu: 0.0.40
codegen_flags: <defaults>
</compile_context>

<pallas_src>
import functools

import jax
import jax.numpy as jnp
from jax.experimental import pallas as pl
from jax.experimental.pallas import tpu as pltpu  # noqa: F401  (TPU backend import)


# ----------------------------- Fused Pallas kernel -------------------------- #

def _fused_gru_policy_kernel(x_ref, p_ref, out_ref, *, n_layers, H, O,
                             in_sizes, w_row_offs, head_row_off, bias_row_off):
    """Fused GRU (seq_len=1, h0=0) stack + Linear + tanh head, single program.

    p_ref (rows, width) slab layout (all offsets static Python ints):
      rows [w_row_offs[0] : +in_0), cols [0:3H)        layer 0 gate weights [r|z|n]
      rows [w_row_offs[l] : +H),    cols [0:3H+O)      layer l>=1 gate weights with
                                                        out_w appended as last O cols
                                                        (fuses layer l-1's head matmul)
      rows [head_row_off : +H),     cols [0:O)          out_w (last layer's head)
      row  [bias_row_off + l],      cols [0:4H)         [b_r+bhr | b_z+bhz | b_ih_n | b_hh_n]
      row  [bias_row_off + L],      cols [0:O)          out_b
    """
    out_b = p_ref[bias_row_off + n_layers:bias_row_off + n_layers + 1, 0:O]  # (1, O)

    h = x_ref[...]                                        # layer input, stays in vregs
    for l in range(n_layers):
        in_l = in_sizes[l]
        w_off = w_row_offs[l]

        if l == 0:
            w = p_ref[w_off:w_off + in_l, 0:3 * H]        # (in0, 3H)
            g = jnp.dot(h, w, preferred_element_type=jnp.float32)        # (B, 3H)
        else:
            # One MXU push: this layer's gates + previous layer's head output.
            w = p_ref[w_off:w_off + in_l, 0:3 * H + O]    # (H, 3H+O)
            gf = jnp.dot(h, w, preferred_element_type=jnp.float32)       # (B, 3H+O)
            out_ref[l - 1] = jnp.tanh(gf[:, 3 * H:3 * H + O] + out_b)
            g = gf[:, 0:3 * H]

        b = p_ref[bias_row_off + l:bias_row_off + l + 1, :]              # (1, >=4H)
        # With h_prev == 0 and seq_len == 1:
        #   gh = h_prev @ W_hh + b_hh == b_hh           (matmul dropped)
        #   h_new = (1 - z) * n + z * h_prev == (1 - z) * n
        r = jax.nn.sigmoid(g[:, 0:H] + b[:, 0:H])
        z = jax.nn.sigmoid(g[:, H:2 * H] + b[:, H:2 * H])
        n = jnp.tanh(g[:, 2 * H:3 * H] + b[:, 2 * H:3 * H] + r * b[:, 3 * H:4 * H])
        h = (1.0 - z) * n

    # Last layer's head (cannot be fused into a following layer).
    ow = p_ref[head_row_off:head_row_off + H, 0:O]                        # (H, O)
    out_ref[n_layers - 1] = jnp.tanh(
        jnp.dot(h, ow, preferred_element_type=jnp.float32) + out_b)


# --------------------------------- Wrapper ----------------------------------- #

def _full_spec(shape):
    # Whole-array block (no grid): block shape == array shape, so the (8,128)
    # divisibility requirement is waived for these small operands.
    return pl.BlockSpec(shape, lambda: tuple(0 for _ in shape))


def make_gru_policy_forward(meta):
    """Build a cached, jitted forward: (x, slab) -> (n_layers, batch, output_size)."""
    kernel = functools.partial(_fused_gru_policy_kernel, **meta)
    n_layers, O = meta["n_layers"], meta["O"]

    @jax.jit
    def forward(x, slab):
        B = x.shape[0]
        return pl.pallas_call(
            kernel,
            out_shape=jax.ShapeDtypeStruct((n_layers, B, O), jnp.float32),
            in_specs=[_full_spec(x.shape), _full_spec(slab.shape)],
            out_specs=_full_spec((n_layers, B, O)),
        )(x, slab)

    return forward


# ------------------------- Parameter init / packing -------------------------- #

def init_gru_policy_params(key, input_size, n_layers, hidden_size, output_size):
    """Deterministic parameter init mirroring nn.GRU / nn.Linear shapes (PyTorch layout)."""
    params = {"layers": []}
    bound = 1.0 / jnp.sqrt(hidden_size).astype(jnp.float32)
    for l in range(n_layers):
        in_size = input_size if l == 0 else hidden_size
        key, k1, k2, k3, k4 = jax.random.split(key, 5)
        params["layers"].append({
            # PyTorch: weight_ih_l{l}: (3H, in), weight_hh_l{l}: (3H, H), gates [r|z|n]
            "w_ih": jax.random.uniform(k1, (3 * hidden_size, in_size),
                                       jnp.float32, -bound, bound),
            "w_hh": jax.random.uniform(k2, (3 * hidden_size, hidden_size),
                                       jnp.float32, -bound, bound),
            "b_ih": jax.random.uniform(k3, (3 * hidden_size,),
                                       jnp.float32, -bound, bound),
            "b_hh": jax.random.uniform(k4, (3 * hidden_size,),
                                       jnp.float32, -bound, bound),
        })
    key, k1, k2 = jax.random.split(key, 3)
    params["out_w"] = jax.random.uniform(k1, (output_size, hidden_size),
                                         jnp.float32, -bound, bound)
    params["out_b"] = jax.random.uniform(k2, (output_size,),
                                         jnp.float32, -bound, bound)
    return params


def _round_up8(x):
    return (x + 7) // 8 * 8


def pack_gru_policy_params(params):
    """One-time prepack into a single kernel-friendly parameter slab (outside fwd path).

    Returns (slab, meta) where slab is one (rows, width) f32 array and meta holds the
    static row offsets / sizes consumed by the kernel.
    """
    L = len(params["layers"])
    H = params["layers"][0]["w_hh"].shape[1]
    O = params["out_w"].shape[0]
    width = max(4 * H, 3 * H + O)

    # Static row layout (each block 8-row aligned).
    in_sizes, w_offs = [], []
    off = 0
    for p in params["layers"]:
        in_l = p["w_ih"].shape[1]
        in_sizes.append(in_l)
        w_offs.append(off)
        off = _round_up8(off + in_l)
    head_off = off
    off = _round_up8(off + H)
    bias_off = off
    n_rows = _round_up8(off + L + 1)

    slab = jnp.zeros((n_rows, width), jnp.float32)
    out_w_t = jnp.asarray(params["out_w"].T, jnp.float32)            # (H, O)

    for l, p in enumerate(params["layers"]):
        in_l = in_sizes[l]
        # w_ih (3H, in) -> transpose to (in, 3H); columns stay gate-major [r|z|n].
        slab = slab.at[w_offs[l]:w_offs[l] + in_l, 0:3 * H].set(
            jnp.asarray(p["w_ih"].T, jnp.float32))
        if l >= 1:
            # Fuse previous layer's head matmul into this layer's gate matmul.
            slab = slab.at[w_offs[l]:w_offs[l] + in_l, 3 * H:3 * H + O].set(out_w_t)
        b_ih = p["b_ih"].reshape(3, H)
        b_hh = p["b_hh"].reshape(3, H)
        # r/z biases fuse exactly; n gate keeps both parts (n = tanh(i_n + b_ih_n + r*b_hh_n)).
        brow = jnp.concatenate(
            [b_ih[0] + b_hh[0], b_ih[1] + b_hh[1], b_ih[2], b_hh[2]])  # (4H,)
        slab = slab.at[bias_off + l, 0:4 * H].set(brow)

    slab = slab.at[head_off:head_off + H, 0:O].set(out_w_t)
    slab = slab.at[bias_off + L, 0:O].set(jnp.asarray(params["out_b"], jnp.float32))

    meta = dict(n_layers=L, H=H, O=O, in_sizes=tuple(in_sizes),
                w_row_offs=tuple(w_offs), head_row_off=head_off,
                bias_row_off=bias_off)
    return jax.block_until_ready(slab), meta


# ----------------------------- Pure-JAX reference ----------------------------- #

def gru_policy_reference(params, x):
    B = x.shape[0]
    hidden = params["layers"][0]["w_hh"].shape[1]
    layer_in = x
    hs = []
    for p in params["layers"]:
        h = jnp.zeros((B, hidden), jnp.float32)
        gi = layer_in @ p["w_ih"].T + p["b_ih"]
        gh = h @ p["w_hh"].T + p["b_hh"]
        i_r, i_z, i_n = jnp.split(gi, 3, axis=1)
        h_r, h_z, h_n = jnp.split(gh, 3, axis=1)
        r = jax.nn.sigmoid(i_r + h_r)
        z = jax.nn.sigmoid(i_z + h_z)
        n = jnp.tanh(i_n + r * h_n)
        h = (1.0 - z) * n + z * h
        hs.append(h)
        layer_in = h
    hn = jnp.stack(hs, axis=0)
    return jnp.tanh(hn @ params["out_w"].T + params["out_b"])


# ------------------------------------ Main ------------------------------------ #

if __name__ == "__main__":
    input_size, n_layers, hidden_size, output_size = 16, 2, 32, 4
    batch = 2

    key = jax.random.PRNGKey(0)
    key, pkey, xkey = jax.random.split(key, 3)
    params = init_gru_policy_params(pkey, input_size, n_layers, hidden_size,
                                    output_size)
    slab, meta = pack_gru_policy_params(params)        # one-time prepack
    forward = make_gru_policy_forward(meta)            # cached jitted dispatch
    x = jax.random.normal(xkey, (batch, input_size), jnp.float32)

    out = jax.block_until_ready(forward(x, slab))      # compile + run
    out = jax.block_until_ready(forward(x, slab))      # cached-dispatch path

    ref = gru_policy_reference(params, x)
    assert out.shape == (n_layers, batch, output_size)
    assert jnp.allclose(out, ref, atol=1e-5, rtol=1e-5), "mismatch vs reference"

    print("KERNEL_OK")
</pallas_src>

<mosaic_0001>
module attributes {stable_mosaic.version = 11 : i64} {
  func.func @_fused_gru_policy_kernel(%arg0: memref<2x16xf32, #tpu.memory_space<vmem>>, %arg1: memref<88x128xf32, #tpu.memory_space<vmem>>, %arg2: memref<2x2x4xf32, #tpu.memory_space<vmem>>) attributes {dimension_semantics = [], scalar_prefetch = 0 : i64, scratch_operands = 0 : i64, tpu.core_type = #tpu.core_type<tc>} {
    %c82 = arith.constant 82 : index
    %c0 = arith.constant 0 : index
    %0 = vector.load %arg1[%c82, %c0] : memref<88x128xf32, #tpu.memory_space<vmem>>, vector<1x4xf32>
    %c0_0 = arith.constant 0 : index
    %c0_1 = arith.constant 0 : index
    %1 = vector.load %arg0[%c0_0, %c0_1] : memref<2x16xf32, #tpu.memory_space<vmem>>, vector<2x16xf32>
    %c0_2 = arith.constant 0 : index
    %c0_3 = arith.constant 0 : index
    %2 = vector.load %arg1[%c0_2, %c0_3] : memref<88x128xf32, #tpu.memory_space<vmem>>, vector<16x96xf32>
    %cst = arith.constant dense<0.000000e+00> : vector<2x96xf32>
    %3 = tpu.matmul %1, %2, %cst {dimension_numbers = #tpu.dot_dimension_numbers<[1], [0], [0], [1], [0, 0, 1, 1], [], []>} : vector<2x16xf32>, vector<16x96xf32>, vector<2x96xf32> -> vector<2x96xf32>
    %c80 = arith.constant 80 : index
    %c0_4 = arith.constant 0 : index
    %4 = vector.load %arg1[%c80, %c0_4] : memref<88x128xf32, #tpu.memory_space<vmem>>, vector<1x128xf32>
    %5 = vector.extract_strided_slice %3 {offsets = [0, 0], sizes = [2, 32], strides = [1, 1]} : vector<2x96xf32> to vector<2x32xf32>
    %6 = vector.extract_strided_slice %4 {offsets = [0, 0], sizes = [1, 32], strides = [1, 1]} : vector<1x128xf32> to vector<1x32xf32>
    %7 = vector.broadcast %6 : vector<1x32xf32> to vector<2x32xf32>
    %8 = arith.addf %5, %7 : vector<2x32xf32>
    %9 = arith.negf %8 : vector<2x32xf32>
    %10 = math.exp %9 : vector<2x32xf32>
    %cst_5 = arith.constant 1.000000e+00 : f32
    %11 = vector.broadcast %cst_5 : f32 to vector<2x32xf32>
    %12 = arith.addf %11, %10 : vector<2x32xf32>
    %13 = arith.divf %11, %12 : vector<2x32xf32>
    %14 = vector.extract_strided_slice %3 {offsets = [0, 32], sizes = [2, 32], strides = [1, 1]} : vector<2x96xf32> to vector<2x32xf32>
    %15 = vector.extract_strided_slice %4 {offsets = [0, 32], sizes = [1, 32], strides = [1, 1]} : vector<1x128xf32> to vector<1x32xf32>
    %16 = vector.broadcast %15 : vector<1x32xf32> to vector<2x32xf32>
    %17 = arith.addf %14, %16 : vector<2x32xf32>
    %18 = arith.negf %17 : vector<2x32xf32>
    %19 = math.exp %18 : vector<2x32xf32>
    %cst_6 = arith.constant 1.000000e+00 : f32
    %20 = vector.broadcast %cst_6 : f32 to vector<2x32xf32>
    %21 = arith.addf %20, %19 : vector<2x32xf32>
    %22 = arith.divf %20, %21 : vector<2x32xf32>
    %23 = vector.extract_strided_slice %3 {offsets = [0, 64], sizes = [2, 32], strides = [1, 1]} : vector<2x96xf32> to vector<2x32xf32>
    %24 = vector.extract_strided_slice %4 {offsets = [0, 64], sizes = [1, 32], strides = [1, 1]} : vector<1x128xf32> to vector<1x32xf32>
    %25 = vector.broadcast %24 : vector<1x32xf32> to vector<2x32xf32>
    %26 = arith.addf %23, %25 : vector<2x32xf32>
    %27 = vector.extract_strided_slice %4 {offsets = [0, 96], sizes = [1, 32], strides = [1, 1]} : vector<1x128xf32> to vector<1x32xf32>
    %28 = vector.broadcast %27 : vector<1x32xf32> to vector<2x32xf32>
    %29 = arith.mulf %13, %28 : vector<2x32xf32>
    %30 = arith.addf %26, %29 : vector<2x32xf32>
    %31 = math.tanh %30 : vector<2x32xf32>
    %cst_7 = arith.constant 1.000000e+00 : f32
    %32 = vector.broadcast %cst_7 : f32 to vector<2x32xf32>
    %33 = arith.subf %32, %22 : vector<2x32xf32>
    %34 = arith.mulf %33, %31 : vector<2x32xf32>
    %c16 = arith.constant 16 : index
    %c0_8 = arith.constant 0 : index
    %35 = vector.load %arg1[%c16, %c0_8] : memref<88x128xf32, #tpu.memory_space<vmem>>, vector<32x100xf32>
    %cst_9 = arith.constant dense<0.000000e+00> : vector<2x100xf32>
    %36 = tpu.matmul %34, %35, %cst_9 {dimension_numbers = #tpu.dot_dimension_numbers<[1], [0], [0], [1], [0, 0, 1, 1], [], []>} : vector<2x32xf32>, vector<32x100xf32>, vector<2x100xf32> -> vector<2x100xf32>
    %37 = vector.extract_strided_slice %36 {offsets = [0, 96], sizes = [2, 4], strides = [1, 1]} : vector<2x100xf32> to vector<2x4xf32>
    %38 = vector.broadcast %0 : vector<1x4xf32> to vector<2x4xf32>
    %39 = arith.addf %37, %38 : vector<2x4xf32>
    %40 = math.tanh %39 : vector<2x4xf32>
    %c0_10 = arith.constant 0 : index
    %c0_11 = arith.constant 0 : index
    %c0_12 = arith.constant 0 : index
    %41 = vector.load %arg2[%c0_10, %c0_11, %c0_12] : memref<2x2x4xf32, #tpu.memory_space<vmem>>, vector<1x2x4xf32>
    %42 = vector.shape_cast %41 : vector<1x2x4xf32> to vector<2x4xf32>
    %43 = vector.shape_cast %40 : vector<2x4xf32> to vector<1x2x4xf32>
    tpu.vector_store %arg2[%c0_10, %c0_11, %c0_12], %43 {strides = array<i32>} : memref<2x2x4xf32, #tpu.memory_space<vmem>>, vector<1x2x4xf32>,
    %44 = vector.extract_strided_slice %36 {offsets = [0, 0], sizes = [2, 96], strides = [1, 1]} : vector<2x100xf32> to vector<2x96xf32>
    %c81 = arith.constant 81 : index
    %c0_13 = arith.constant 0 : index
    %45 = vector.load %arg1[%c81, %c0_13] : memref<88x128xf32, #tpu.memory_space<vmem>>, vector<1x128xf32>
    %46 = vector.extract_strided_slice %44 {offsets = [0, 0], sizes = [2, 32], strides = [1, 1]} : vector<2x96xf32> to vector<2x32xf32>
    %47 = vector.extract_strided_slice %45 {offsets = [0, 0], sizes = [1, 32], strides = [1, 1]} : vector<1x128xf32> to vector<1x32xf32>
    %48 = vector.broadcast %47 : vector<1x32xf32> to vector<2x32xf32>
    %49 = arith.addf %46, %48 : vector<2x32xf32>
    %50 = arith.negf %49 : vector<2x32xf32>
    %51 = math.exp %50 : vector<2x32xf32>
    %cst_14 = arith.constant 1.000000e+00 : f32
    %52 = vector.broadcast %cst_14 : f32 to vector<2x32xf32>
    %53 = arith.addf %52, %51 : vector<2x32xf32>
    %54 = arith.divf %52, %53 : vector<2x32xf32>
    %55 = vector.extract_strided_slice %44 {offsets = [0, 32], sizes = [2, 32], strides = [1, 1]} : vector<2x96xf32> to vector<2x32xf32>
    %56 = vector.extract_strided_slice %45 {offsets = [0, 32], sizes = [1, 32], strides = [1, 1]} : vector<1x128xf32> to vector<1x32xf32>
    %57 = vector.broadcast %56 : vector<1x32xf32> to vector<2x32xf32>
    %58 = arith.addf %55, %57 : vector<2x32xf32>
    %59 = arith.negf %58 : vector<2x32xf32>
    %60 = math.exp %59 : vector<2x32xf32>
    %cst_15 = arith.constant 1.000000e+00 : f32
    %61 = vector.broadcast %cst_15 : f32 to vector<2x32xf32>
    %62 = arith.addf %61, %60 : vector<2x32xf32>
    %63 = arith.divf %61, %62 : vector<2x32xf32>
    %64 = vector.extract_strided_slice %44 {offsets = [0, 64], sizes = [2, 32], strides = [1, 1]} : vector<2x96xf32> to vector<2x32xf32>
    %65 = vector.extract_strided_slice %45 {offsets = [0, 64], sizes = [1, 32], strides = [1, 1]} : vector<1x128xf32> to vector<1x32xf32>
    %66 = vector.broadcast %65 : vector<1x32xf32> to vector<2x32xf32>
    %67 = arith.addf %64, %66 : vector<2x32xf32>
    %68 = vector.extract_strided_slice %45 {offsets = [0, 96], sizes = [1, 32], strides = [1, 1]} : vector<1x128xf32> to vector<1x32xf32>
    %69 = vector.broadcast %68 : vector<1x32xf32> to vector<2x32xf32>
    %70 = arith.mulf %54, %69 : vector<2x32xf32>
    %71 = arith.addf %67, %70 : vector<2x32xf32>
    %72 = math.tanh %71 : vector<2x32xf32>
    %cst_16 = arith.constant 1.000000e+00 : f32
    %73 = vector.broadcast %cst_16 : f32 to vector<2x32xf32>
    %74 = arith.subf %73, %63 : vector<2x32xf32>
    %75 = arith.mulf %74, %72 : vector<2x32xf32>
    %c48 = arith.constant 48 : index
    %c0_17 = arith.constant 0 : index
    %76 = vector.load %arg1[%c48, %c0_17] : memref<88x128xf32, #tpu.memory_space<vmem>>, vector<32x4xf32>
    %cst_18 = arith.constant dense<0.000000e+00> : vector<2x4xf32>
    %77 = tpu.matmul %75, %76, %cst_18 {dimension_numbers = #tpu.dot_dimension_numbers<[1], [0], [0], [1], [0, 0, 1, 1], [], []>} : vector<2x32xf32>, vector<32x4xf32>, vector<2x4xf32> -> vector<2x4xf32>
    %78 = vector.broadcast %0 : vector<1x4xf32> to vector<2x4xf32>
    %79 = arith.addf %77, %78 : vector<2x4xf32>
    %80 = math.tanh %79 : vector<2x4xf32>
    %c1 = arith.constant 1 : index
    %c0_19 = arith.constant 0 : index
    %c0_20 = arith.constant 0 : index
    %81 = vector.load %arg2[%c1, %c0_19, %c0_20] : memref<2x2x4xf32, #tpu.memory_space<vmem>>, vector<1x2x4xf32>
    %82 = vector.shape_cast %81 : vector<1x2x4xf32> to vector<2x4xf32>
    %83 = vector.shape_cast %80 : vector<2x4xf32> to vector<1x2x4xf32>
    tpu.vector_store %arg2[%c1, %c0_19, %c0_20], %83 {strides = array<i32>} : memref<2x2x4xf32, #tpu.memory_space<vmem>>, vector<1x2x4xf32>,
    return
  }
}

</mosaic_0001>

<bundles_post_ra>
// kernel: forward.1
= control target key start
LH: loop header
LB: loop body
LE: loop exit
PB: predicated region body
PF: predicated region fallthrough
CT: control target
= control target key end

     0   :  { %7 = vsyncpa [#allocation3], 0  ;;  %s627_s0 = inlined_call_operand.hbm [shape: f32[2,16], index: 0, kind: input, shape index: {}]   ;;  %s628_s1 = inlined_call_operand.hbm [shape: f32[88,128], index: 1, kind: input, shape index: {}]   ;;  %s629_s2 = inlined_call_operand.hbm [shape: f32[2,2,4], index: 2, kind: output, shape index: {}]  }
   0x1   :  { %8 = vsyncpa [#allocation6], 0 }
   0x2   :  { %9 = vsyncpa [#allocation4], 0  ;;  %s535_s9 = smov [#allocation2]   ;;  %s536_s11 = smov [#allocation5]  }
   0x3   :  { %s16_s10 = sshll.u32 %s535_s9, 4  ;;  %s25_s12 = sshll.u32 %s536_s11, 4  ;;  %s17_s10 = int_to_ptr.vmem [resolvable:$true] %s16_s10  ;;  %s562_s12 = int_to_ptr.vmem [resolvable:$true] %s25_s12 }
   0x4   :  { %s463_s15 = scalar_lea.hbm %s627_s0, 32 }
   0x5   :  { %p464_p0 = scmp.ne.s32.totalorder %s627_s0, %s463_s15  ;;  %p467_p1 = scmp.lt.u32.totalorder %s463_s15, %s627_s0 }
   0x7   :  { %p469_p2 = pnand %p467_p1, %p464_p0 }
   0x9   :  { %472 = shalt.err (!%p469_p2)
}
   0xa   :  { %s473_s20 = scalar_lea.vmem %s17_s10, 32  ;;  %p478_p4 = scmp.lt.s32.totalorder %s17_s10, %s17_s10 }
   0xb   :  { %p474_p3 = scmp.ne.s32.totalorder %s17_s10, %s473_s20  ;;  %p479_p5 = scmp.lt.s32.totalorder %s473_s20, %s473_s20 }
   0xd   :  { %p480_p6 = por %p479_p5, %p478_p4 }
   0xf   :  { %p481_p7 = pnand %p480_p6, %p474_p3 }
  0x11   :  { %484 = shalt.err (!%p481_p7)
}
  0x12   :  { %19 = dma.hbm_to_vmem [thread:$0]  %s627_s0, 32, %s17_s10, [#allocation3]  }
  0x13   :  { %s485_s25 = scalar_lea.hbm %s628_s1, 1408 }
  0x14   :  { %p486_p8 = scmp.ne.s32.totalorder %s628_s1, %s485_s25  ;;  %p489_p9 = scmp.lt.u32.totalorder %s485_s25, %s628_s1 }
  0x16   :  { %p491_p10 = pnand %p489_p9, %p486_p8 }
  0x18   :  { %494 = shalt.err (!%p491_p10)
}
  0x19   :  { %s495_s30 = scalar_lea.vmem %s562_s12, 1408  ;;  %p500_p12 = scmp.lt.s32.totalorder %s562_s12, %s562_s12 }
  0x1a   :  { %p496_p11 = scmp.ne.s32.totalorder %s562_s12, %s495_s30  ;;  %p501_p13 = scmp.lt.s32.totalorder %s495_s30, %s495_s30 }
  0x1c   :  { %p502_p0 = por %p501_p13, %p500_p12 }
  0x1e   :  { %p503_p1 = pnand %p502_p0, %p496_p11 }
  0x20   :  { %506 = shalt.err (!%p503_p1)
}
  0x21   :  { %s537_s0 = smov 128   ;;  %s538_s3 = smov 8  }
  0x22   :  { %31 = dma.hbm_to_vmem [thread:$0]  %s628_s1, 1408, %s562_s12, [#allocation6], %s537_s0, %s537_s0, %s538_s3  }
  0x23   :  { %529 = dma.done.wait [#allocation3], 32  }
  0x24   :  { %530 = vsyncadd [#allocation3], 4294967264 }
  0x25   :  { %531 = dma.done.wait [#allocation6], 1408  }
  0x26   :  { %532 = vsyncadd [#allocation6], 4294965888  ;;  %v539_v0 = vmov 0.0|0.0   ;;  %vm540_vm0 = vmmov 0   ;;  %v541_v1 = vmov 0.0   ;;  %v40_v2 = vld [vmem:[#allocation5] sm:$0xff] }
  0x27   :  { %420 = vmatprep.subr.bf16.mxu0 %v539_v0  ;;  %395 = vmatprep.mubr.msk.f32.mxu0 %vm540_vm0, %v541_v1  ;;  %v41_v3 = vld [vmem:[#allocation5 + $0x8] sm:$0xff]  ;;  %v371_v5 = vld [vmem:[#allocation5 + $0x50] ss:$0 sm:$0xff]  ;;  %s542_s1 = smov 32   ;;  %v39_v6 = vld [vmem:[#allocation2] sm:$0x3] }
  0x28   :  { %423 = vmatprep.subr.bf16.mxu1 %v539_v0  ;;  %406 = vmatprep.mubr.msk.f32.mxu1 %vm540_vm0, %v541_v1  ;;  %v421_v4 = vpack.c.bf16 %v41_v3, %v40_v2  ;;  %vm42_vm1 = vcmask 130048   ;;  %s543_s6 = smov 64   ;;  %v145_v18 = vld [vmem:[#allocation5 + $0x10] sm:$0xff]  ;;  %v146_v19 = vld [vmem:[#allocation5 + $0x18] sm:$0xff]  ;;  %v147_v20 = vld [vmem:[#allocation5 + $0x20] sm:$0xff]  ;;  %s544_s7 = smov 96  }
  0x29   :  { %129 = vrot.lane.b32.xlu0 %v371_v5, %s542_s1  ;;  %v424_v21 = vpack.c.bf16 %v146_v19, %v145_v18  ;;  %v148_v22 = vld [vmem:[#allocation5 + $0x28] sm:$0xff]  ;;  %v375_v25 = vld [vmem:[#allocation5 + $0x51] ss:$0 sm:$0xff]  ;;  %vm152_vm2 = vcmask 261120   ;;  %v374_v42 = vld [vmem:[#allocation5 + $0x52] ss:$0 sm:$0xff] }
  0x2a   :  { %422 = vmatpush3.bf16.msra.mxu0 %v421_v4  ;;  %v427_v23 = vpack.c.bf16 %v148_v22, %v147_v20  ;;  %v270_v43 = vld [vmem:[#allocation5 + $0x30] sm:$0xff]  ;;  %v271_v44 = vld [vmem:[#allocation5 + $0x38] sm:$0xff]  ;;  %v272_v45 = vld [vmem:[#allocation5 + $0x40] sm:$0xff]  ;;  %vm239_vm3 = vcmask 25600   ;;  %s545_s8 = smov [#allocation7]  }
  0x2b   :  { %429 = vmatprep.subr.bf16.mxu0 %v539_v0  ;;  %425 = vmatpush3.bf16.msra.mxu1 %v424_v21  ;;  %v430_v46 = vpack.c.bf16 %v271_v44, %v270_v43  ;;  %v273_v47 = vld [vmem:[#allocation5 + $0x48] sm:$0xff]  ;;  %s357_s9 = sshll.u32 %s545_s8, 4  ;;  %s358_s9 = int_to_ptr.vmem [resolvable:$true] %s357_s9 }
  0x2c   :  { %426 = vmatprep.subr.bf16.mxu1 %v539_v0  ;;  %v433_v48 = vpack.c.bf16 %v273_v47, %v272_v45  ;;  %s507_s10 = scalar_lea.vmem %s358_s9, 64  ;;  %p512_p3 = scmp.lt.s32.totalorder %s358_s9, %s358_s9 }
  0x2d   :  { %396 = vmatmul.mubr.msk.f32.vlgmr.msra.gmra.mrb[0].mxu0 %vm42_vm1, %v39_v6  ;;  %p508_p2 = scmp.ne.s32.totalorder %s358_s9, %s507_s10  ;;  %p513_p4 = scmp.lt.s32.totalorder %s507_s10, %s507_s10 }
  0x2e   :  { %417 = vmatprep.mubr.msk.f32.mxu0 %vm540_vm0, %v541_v1  ;;  %431 = vmatpush3.bf16.msra.mxu0 %v430_v46 }
  0x2f   :  { %428 = vmatpush3.bf16.msra.mxu1 %v427_v23  ;;  %432 = vmatprep.subr.bf16.mxu0 %v539_v0  ;;  %p514_p5 = por %p513_p4, %p512_p3 }
  0x31   :  { %p515_p6 = pnand %p514_p5, %p508_p2 }
  0x32   :  { %434 = vmatpush3.bf16.msra.mxu0 %v433_v48 }
  0x9b   :  { %v130_v13 = vpop.permute.xlu0 %129 }
 0x100   :  { %v112_v7 = vpop.f32.mrb[0].mxu0 }
 0x101   :  { %v121_v8 = vadd.f32 %v371_v5, %v112_v7  ;;  %v397_v9 = vpop.f32.mrb[1].mxu0 }
 0x103   :  { %v372_v10 = vmul.f32 -1.442695, %v121_v8 }
 0x105   :  { %447 = vpow2.f32 %v372_v10 }
 0x10f   :  { %v448_v11 = vpop.eup %447 }
 0x110   :  { %v125_v12 = vadd.f32 1.0, %v448_v11 }
 0x112   :  { %449 = vrcp.f32 %v125_v12 }
 0x11c   :  { %v450_v14 = vpop.eup %449 }
 0x11d   :  { %v132_v15 = vmul.f32 %v450_v14, %v130_v13  ;;  %v139_v26 = vsub.f32 1.0, %v450_v14 }
 0x11f   :  { %134 = vrot.lane.b32.xlu0 %v132_v15, %s543_s6 }
 0x123   :  { %254 = vrot.lane.b32.xlu0 %v375_v25, %s542_s1 }
 0x191   :  { %v135_v16 = vpop.permute.xlu0 %134 }
 0x192   :  { %v137_v17 = vadd.f32 %v135_v16, %v121_v8 }
 0x194   :  { %451 = vtanh.f32 %v137_v17 }
 0x195   :  { %v255_v36 = vpop.permute.xlu0 %254 }
 0x19e   :  { %v452_v24 = vpop.eup %451 }
 0x19f   :  { %141 = vrot.lane.b32.xlu1 %v452_v24, %s544_s7 }
 0x211   :  { %v142_v27 = vpop.permute.xlu1 %141 }
 0x212   :  { %v144_v28 = vmul.f32 %v142_v27, %v139_v26 }
 0x214   :  { %150 = vrot.lane.b32.xlu1 %v144_v28, %s544_s7 }
 0x286   :  { %v151_v29 = vpop.permute.xlu1 %150 }
 0x287   :  { %407 = vmatmul.mubr.msk.f32.vlgmr.msra.gmra.mrb[0].mxu1 %vm152_vm2, %v151_v29 }
 0x35a   :  { %v221_v30 = vpop.f32.mrb[0].mxu1 }
 0x35b   :  { %v246_v31 = vadd.f32 %v375_v25, %v221_v30  ;;  %v408_v32 = vpop.f32.mrb[1].mxu1 }
 0x35d   :  { %v376_v33 = vmul.f32 -1.442695, %v246_v31 }
 0x35f   :  { %453 = vpow2.f32 %v376_v33 }
 0x369   :  { %v454_v34 = vpop.eup %453 }
 0x36a   :  { %v250_v35 = vadd.f32 1.0, %v454_v34 }
 0x36c   :  { %455 = vrcp.f32 %v250_v35 }
 0x376   :  { %v456_v37 = vpop.eup %455 }
 0x377   :  { %v257_v38 = vmul.f32 %v456_v37, %v255_v36  ;;  %v264_v49 = vsub.f32 1.0, %v456_v37 }
 0x379   :  { %259 = vrot.lane.b32.xlu1 %v257_v38, %s543_s6 }
 0x3eb   :  { %v260_v39 = vpop.permute.xlu1 %259 }
 0x3ec   :  { %v262_v40 = vadd.f32 %v260_v39, %v246_v31 }
 0x3ee   :  { %457 = vtanh.f32 %v262_v40 }
 0x3f8   :  { %v458_v41 = vpop.eup %457 }
 0x3f9   :  { %266 = vrot.lane.b32.xlu0 %v458_v41, %s544_s7 }
 0x3fd   :  { %230 = vrot.lane.b32.xlu0 %v374_v42, %s544_s7 }
 0x46b   :  { %v267_v50 = vpop.permute.xlu0 %266 }
 0x46c   :  { %v269_v51 = vmul.f32 %v267_v50, %v264_v49 }
 0x46e   :  { %275 = vrot.lane.b32.xlu1 %v269_v51, %s544_s7 }
 0x46f   :  { %v231_v52 = vpop.permute.xlu0 %230 }
 0x470   :  { %v233_v53 = vadd.f32 %v231_v52, %v221_v30 }
 0x472   :  { %459 = vtanh.f32 %v233_v53 }
 0x47c   :  { %v460_v54 = vpop.eup %459 }
 0x47d   :  { %236 = vrot.lane.b32.xlu1 %v460_v54, %s542_s1 }
 0x4e0   :  { %v276_v55 = vpop.permute.xlu1 %275 }
 0x4e1   :  { %418 = vmatmul.mubr.msk.f32.vlgmr.msra.gmra.mrb[2].mxu0 %vm152_vm2, %v276_v55 }
 0x4ef   :  { %v237_v56 = vpop.permute.xlu1 %236 }
 0x4f0   :  { %240 = vst.msk [vmem:[#allocation7] sm:$0x3] %vm239_vm3, %v237_v56 }
 0x5b4   :  { %v345_v57 = vpop.f32.mrb[2].mxu0 }
 0x5b5   :  { %v346_v58 = vadd.f32 %v374_v42, %v345_v57  ;;  %v419_v59 = vpop.f32.mrb[3].mxu0 }
 0x5b7   :  { %461 = vtanh.f32 %v346_v58 }
 0x5c1   :  { %v462_v60 = vpop.eup %461 }
 0x5c2   :  { %351 = vst.msk [vmem:[#allocation7 + $0x2] sm:$0x3] %vm239_vm3, %v462_v60 }
 0x5c3   :  { %518 = shalt.err (!%p515_p6)
}
 0x5c4   :  { %s519_s13 = scalar_lea.hbm %s629_s2, 64 }
 0x5c5   :  { %p520_p7 = scmp.ne.s32.totalorder %s629_s2, %s519_s13  ;;  %p523_p8 = scmp.lt.u32.totalorder %s519_s13, %s629_s2 }
 0x5c7   :  { %p525_p9 = pnand %p523_p8, %p520_p7 }
 0x5c9   :  { %528 = shalt.err (!%p525_p9)
}
 0x5ca   :  { %s546_s18 = smov 2  }
 0x5cb   :  { %363 = dma.vmem_to_hbm [thread:$0]  %s358_s9, 64, %s629_s2, [#allocation4], %s542_s1, %s542_s1, %s546_s18  }
 0x5cc   :  { %533 = dma.done.wait [#allocation4], 64  }
 0x5cd   :  { %534 = vsyncadd [#allocation4], 4294967232 }
 0x5ce   :  { %367 = vsyncpa [#allocation3], 1 }
 0x5cf   :  { %368 = vsyncpa [#allocation6], 1 }
 0x5d0   :  { %369 = vsyncpa [#allocation4], 1 }

</bundles_post_ra>
